<compile_context>
chip_gen: v6e
topology: v6e:2x2x1
jax: 0.10.0
libtpu: 0.0.40
codegen_flags: <defaults>
</compile_context>

<pallas_src>
import functools

import jax
import jax.numpy as jnp
from jax import lax
from jax.experimental import pallas as pl
from jax.experimental.pallas import tpu as pltpu


# ----------------------------- helpers ---------------------------------------


def _pick_tile(dim, target, align):
    """Largest multiple of `align` that divides `dim` and is <= target,
    else the full dim (full-dim blocks always satisfy the (8,128) rule)."""
    t = min(target, dim)
    t = (t // align) * align
    while t >= align:
        if dim % t == 0:
            return t
        t -= align
    return dim


def _vmem_limit_bytes():
    """96 MiB on 128-MiB VMEM parts (v5e/v6e), 32 MiB on 64-MiB parts (v7x)."""
    cap = 64 * 1024 * 1024  # conservative fallback (v7x physical VMEM)
    try:
        info = pltpu.get_tpu_info()
        cap = int(getattr(info, "vmem_capacity_bytes", cap))
    except Exception:
        pass
    if cap >= 100 * 1024 * 1024:
        return 96 * 1024 * 1024
    return 32 * 1024 * 1024


# ----------------------------- tiled linear ----------------------------------


def _linear_kernel_acc(x_ref, w_ref, b_ref, o_ref, acc_ref):
    # x: (tm, tk), w: (tk, tn), b: (1, tn) f32, o: (tm, tn); K is the last grid axis.
    @pl.when(pl.program_id(2) == 0)
    def _():
        acc_ref[...] = jnp.zeros_like(acc_ref)

    acc_ref[...] += jnp.dot(x_ref[...], w_ref[...],
                            preferred_element_type=jnp.float32)

    @pl.when(pl.program_id(2) == pl.num_programs(2) - 1)
    def _():
        o_ref[...] = (acc_ref[...] + b_ref[...]).astype(o_ref.dtype)


def _linear_kernel_single(x_ref, w_ref, b_ref, o_ref):
    # Single K step: no f32 scratch round-trip, no branches.
    o_ref[...] = (jnp.dot(x_ref[...], w_ref[...],
                          preferred_element_type=jnp.float32)
                  + b_ref[...]).astype(o_ref.dtype)


def linear(x2d, w, b, *, out_dtype=None, compute_dtype=jnp.bfloat16,
           tm_target=512, tn_target=512, tk_target=512):
    """x2d: (M, K), w: (K, N), b: (N,) -> (M, N). Tiled + pipelined, bf16 MXU
    operands, f32 accumulation."""
    M, K = x2d.shape
    N = w.shape[1]
    out_dtype = out_dtype if out_dtype is not None else x2d.dtype

    # bf16 operands: halves DMA bytes and doubles MXU throughput on v6e/v7x.
    # (In a real model the params would already be stored in bf16.)
    xc = x2d.astype(compute_dtype)
    wc = w.astype(compute_dtype)
    bf = b.astype(jnp.float32).reshape(1, N)

    tm = _pick_tile(M, tm_target, 8)     # second-minor: multiple of 8 (or full)
    tk = _pick_tile(K, tk_target, 128)   # lane dim of x / second-minor of w
    tn = _pick_tile(N, tn_target, 128)   # lane dim of w / b / out
    kt = K // tk
    vmem = _vmem_limit_bytes()
    in_item = jnp.dtype(compute_dtype).itemsize
    cost = pl.CostEstimate(
        flops=2 * M * N * K,
        transcendentals=0,
        bytes_accessed=(M * K + K * N) * in_item
        + M * N * jnp.dtype(out_dtype).itemsize + N * 4)

    if kt == 1:
        return pl.pallas_call(
            _linear_kernel_single,
            out_shape=jax.ShapeDtypeStruct((M, N), out_dtype),
            grid_spec=pltpu.PrefetchScalarGridSpec(
                num_scalar_prefetch=0,
                grid=(M // tm, N // tn),
                in_specs=[
                    pl.BlockSpec((tm, K), lambda i, j: (i, 0)),
                    pl.BlockSpec((K, tn), lambda i, j: (0, j)),
                    pl.BlockSpec((1, tn), lambda i, j: (0, j)),
                ],
                out_specs=pl.BlockSpec((tm, tn), lambda i, j: (i, j)),
            ),
            compiler_params=pltpu.CompilerParams(
                dimension_semantics=("parallel", "parallel"),
                vmem_limit_bytes=vmem),
            cost_estimate=cost,
        )(xc, wc, bf)

    return pl.pallas_call(
        _linear_kernel_acc,
        out_shape=jax.ShapeDtypeStruct((M, N), out_dtype),
        grid_spec=pltpu.PrefetchScalarGridSpec(
            num_scalar_prefetch=0,
            grid=(M // tm, N // tn, kt),
            in_specs=[
                pl.BlockSpec((tm, tk), lambda i, j, k: (i, k)),
                pl.BlockSpec((tk, tn), lambda i, j, k: (k, j)),
                pl.BlockSpec((1, tn), lambda i, j, k: (0, j)),
            ],
            out_specs=pl.BlockSpec((tm, tn), lambda i, j, k: (i, j)),
            scratch_shapes=[pltpu.VMEM((tm, tn), jnp.float32)],
        ),
        compiler_params=pltpu.CompilerParams(
            dimension_semantics=("parallel", "parallel", "arbitrary"),
            vmem_limit_bytes=vmem),
        cost_estimate=cost,
    )(xc, wc, bf)


# ----------------------------- flash attention kernel -------------------------


def flash_attn_kernel(q_ref, k_ref, v_ref, o_ref,
                      m_sc, l_sc, acc_sc, oacc_sc, *, num_heads, head_dim):
    # q_ref: (H, tq, hd)   k_ref/v_ref: (H, tkv, hd)   o_ref: (tq, H*hd)
    # Scale is already folded into q (via the qkv projection weights).
    ki = pl.program_id(2)

    @pl.when(ki == 0)
    def _():
        m_sc[...] = jnp.full_like(m_sc, -jnp.inf)
        l_sc[...] = jnp.zeros_like(l_sc)
        acc_sc[...] = jnp.zeros_like(acc_sc)

    # Batched-over-heads QK^T: (H, tq, hd) x (H, tkv, hd) -> (H, tq, tkv).
    s = lax.dot_general(q_ref[...], k_ref[...],
                        dimension_numbers=(((2,), (2,)), ((0,), (0,))),
                        preferred_element_type=jnp.float32)

    m_prev = m_sc[...]
    m_new = jnp.maximum(m_prev, jnp.max(s, axis=-1, keepdims=True))
    alpha = jnp.exp(m_prev - m_new)
    p = jnp.exp(s - m_new)                                   # f32 (EUP)
    l_sc[...] = alpha * l_sc[...] + jnp.sum(p, axis=-1, keepdims=True)
    # Batched-over-heads PV: (H, tq, tkv) x (H, tkv, hd) -> (H, tq, hd).
    pv = lax.dot_general(p.astype(v_ref.dtype), v_ref[...],
                         dimension_numbers=(((2,), (1,)), ((0,), (0,))),
                         preferred_element_type=jnp.float32)
    acc_sc[...] = alpha * acc_sc[...] + pv
    m_sc[...] = m_new

    @pl.when(ki == pl.num_programs(2) - 1)
    def _():
        denom = l_sc[...]
        r = pl.reciprocal(denom, approx=True)   # EUP slot (otherwise idle)
        r = r * (2.0 - denom * r)               # one Newton step -> ~f32 accuracy
        out = acc_sc[...] * r                   # (H, tq, hd) f32
        # Assemble all heads into a full-width (tq, D) scratch (epilogue only),
        # then do ONE lane-dense store to the pipelined output buffer.
        for h in range(num_heads):
            oacc_sc[:, h * head_dim:(h + 1) * head_dim] = out[h]
        o_ref[...] = oacc_sc[...].astype(o_ref.dtype)


# ----------------------------- wrapper ----------------------------------------


def attention_forward(x, w_qkv, b_qkv, w_out, b_out, num_heads,
                      *, compute_dtype=jnp.bfloat16):
    """Matches Attention.forward semantics. x: (B, S, D).

    Layout contract (asserted): w_qkv is (D, 3*D) with feature order
    c*D + h*hd + d (i.e. [Q | K | V], matching nn.Linear(dim, 3*dim).weight.T
    and the PyTorch reshape (B, S, 3, H, hd))."""
    B, S, Dm = x.shape
    assert Dm % num_heads == 0
    hd = Dm // num_heads
    assert w_qkv.shape == (Dm, 3 * Dm) and b_qkv.shape == (3 * Dm,)
    assert w_out.shape == (Dm, Dm) and b_out.shape == (Dm,)
    scale = float(hd) ** -0.5

    # Fold the softmax scale into the Q columns of the qkv projection params.
    scale_cols = jnp.concatenate([jnp.full((Dm,), scale, jnp.float32),
                                  jnp.ones((2 * Dm,), jnp.float32)])
    w_qkv_s = w_qkv.astype(jnp.float32) * scale_cols[None, :]
    b_qkv_s = b_qkv.astype(jnp.float32) * scale_cols

    # qkv projection (tiled Pallas matmul + bias), carried in bf16.
    qkv = linear(x.reshape(B * S, Dm), w_qkv_s, b_qkv_s,
                 out_dtype=compute_dtype, compute_dtype=compute_dtype)

    # One-time relayout to per-head (B, H, S, hd) so the attention kernel gets
    # contiguous, head-batched blocks (no per-head lane slicing in the kernel).
    qkv = qkv.reshape(B, S, 3, num_heads, hd)
    qkvt = jnp.transpose(qkv, (2, 0, 3, 1, 4))       # (3, B, H, S, hd)
    q, k, v = qkvt[0], qkvt[1], qkvt[2]

    tq = _pick_tile(S, 256, 8)
    tkv = _pick_tile(S, 256, 8)
    nq = S // tq
    nkv = S // tkv
    vmem = _vmem_limit_bytes()
    in_item = jnp.dtype(compute_dtype).itemsize

    attn_out = pl.pallas_call(
        functools.partial(flash_attn_kernel, num_heads=num_heads, head_dim=hd),
        out_shape=jax.ShapeDtypeStruct((B, S, Dm), compute_dtype),
        grid_spec=pltpu.PrefetchScalarGridSpec(
            num_scalar_prefetch=0,
            grid=(B, nq, nkv),
            in_specs=[
                pl.BlockSpec((None, num_heads, tq, hd),
                             lambda b, qi, ki: (b, 0, qi, 0)),
                pl.BlockSpec((None, num_heads, tkv, hd),
                             lambda b, qi, ki: (b, 0, ki, 0)),
                pl.BlockSpec((None, num_heads, tkv, hd),
                             lambda b, qi, ki: (b, 0, ki, 0)),
            ],
            out_specs=pl.BlockSpec((None, tq, Dm),
                                   lambda b, qi, ki: (b, qi, 0)),
            scratch_shapes=[
                pltpu.VMEM((num_heads, tq, 1), jnp.float32),    # running max
                pltpu.VMEM((num_heads, tq, 1), jnp.float32),    # running sum
                pltpu.VMEM((num_heads, tq, hd), jnp.float32),   # f32 accumulator
                pltpu.VMEM((tq, Dm), jnp.float32),              # lane-dense assembly
            ]),
        compiler_params=pltpu.CompilerParams(
            dimension_semantics=("parallel", "parallel", "arbitrary"),
            vmem_limit_bytes=vmem),
        cost_estimate=pl.CostEstimate(
            flops=4 * B * num_heads * S * S * hd,
            transcendentals=B * num_heads * S * S,
            bytes_accessed=4 * B * S * Dm * in_item),
    )(q, k, v)

    # output projection (tiled Pallas matmul + bias); reshape is free.
    out = linear(attn_out.reshape(B * S, Dm), w_out, b_out,
                 out_dtype=x.dtype, compute_dtype=compute_dtype)
    return out.reshape(B, S, Dm)


# ----------------------------- reference -------------------------------------


def attention_reference(x, w_qkv, b_qkv, w_out, b_out, num_heads):
    B, S, D = x.shape
    hd = D // num_heads
    scale = float(hd) ** -0.5
    qkv = (x.reshape(B * S, D) @ w_qkv + b_qkv).reshape(B, S, 3, num_heads, hd)
    q, k, v = jnp.transpose(qkv, (2, 0, 3, 1, 4))
    scores = jnp.einsum("bhqd,bhkd->bhqk", q, k) * scale
    attn = jax.nn.softmax(scores, axis=-1)
    out = jnp.einsum("bhqk,bhkd->bhqd", attn, v)
    out = jnp.transpose(out, (0, 2, 1, 3)).reshape(B * S, D)
    return (out @ w_out + b_out).reshape(B, S, D)


# ----------------------------- main -------------------------------------------


if __name__ == "__main__":
    B, S, D = 2, 8, 32
    num_heads = 4

    key = jax.random.PRNGKey(0)
    kx, k1, k2, k3, k4 = jax.random.split(key, 5)

    x = jax.random.normal(kx, (B, S, D), dtype=jnp.float32)

    # nn.Linear(dim, dim*3): weight (3D, D), bias (3D,). Stored pre-transposed.
    w_qkv = (jax.random.normal(k1, (3 * D, D), dtype=jnp.float32) * 0.02).T  # (D, 3D)
    b_qkv = jax.random.normal(k2, (3 * D,), dtype=jnp.float32) * 0.02
    # nn.Linear(dim, dim): weight (D, D), bias (D,).
    w_out = (jax.random.normal(k3, (D, D), dtype=jnp.float32) * 0.02).T      # (D, D)
    b_out = jax.random.normal(k4, (D,), dtype=jnp.float32) * 0.02

    y = attention_forward(x, w_qkv, b_qkv, w_out, b_out, num_heads)
    y = jax.block_until_ready(y)

    y_ref = attention_reference(x, w_qkv, b_qkv, w_out, b_out, num_heads)
    assert y.shape == (B, S, D)
    assert y.dtype == x.dtype
    max_err = float(jnp.max(jnp.abs(y - y_ref)))
    # bf16 MXU operands (f32 accumulation / softmax stats) => bf16-level tolerance.
    assert jnp.allclose(y, y_ref, atol=1e-2, rtol=5e-2), (
        f"mismatch vs reference (max abs err {max_err})")

    print("KERNEL_OK")
</pallas_src>

<mosaic_0001>
module attributes {stable_mosaic.version = 11 : i64} {
  func.func @_linear_kernel_single(%arg0: i32, %arg1: i32, %arg2: memref<16x32xbf16, #tpu.memory_space<vmem>>, %arg3: memref<32x96xbf16, #tpu.memory_space<vmem>>, %arg4: memref<1x96xf32, #tpu.memory_space<vmem>>, %arg5: memref<16x96xbf16, #tpu.memory_space<vmem>>) attributes {dimension_semantics = [#tpu.dimension_semantics<parallel>, #tpu.dimension_semantics<parallel>], iteration_bounds = array<i64: 1, 1>, scalar_prefetch = 0 : i64, scratch_operands = 0 : i64, tpu.core_type = #tpu.core_type<tc>, window_params = [{transform_indices = @transform_0, window_bounds = array<i64: 16, 32>}, {transform_indices = @transform_1, window_bounds = array<i64: 32, 96>}, {transform_indices = @transform_2, window_bounds = array<i64: 1, 96>}, {transform_indices = @transform_3, window_bounds = array<i64: 16, 96>}]} {
    %c0 = arith.constant 0 : index
    %c0_0 = arith.constant 0 : index
    %0 = vector.load %arg2[%c0, %c0_0] : memref<16x32xbf16, #tpu.memory_space<vmem>>, vector<16x32xbf16>
    %c0_1 = arith.constant 0 : index
    %c0_2 = arith.constant 0 : index
    %1 = vector.load %arg3[%c0_1, %c0_2] : memref<32x96xbf16, #tpu.memory_space<vmem>>, vector<32x96xbf16>
    %cst = arith.constant dense<0.000000e+00> : vector<16x96xf32>
    %2 = tpu.matmul %0, %1, %cst {dimension_numbers = #tpu.dot_dimension_numbers<[1], [0], [0], [1], [0, 0, 1, 1], [], []>} : vector<16x32xbf16>, vector<32x96xbf16>, vector<16x96xf32> -> vector<16x96xf32>
    %c0_3 = arith.constant 0 : index
    %c0_4 = arith.constant 0 : index
    %3 = vector.load %arg4[%c0_3, %c0_4] : memref<1x96xf32, #tpu.memory_space<vmem>>, vector<1x96xf32>
    %4 = vector.broadcast %3 : vector<1x96xf32> to vector<16x96xf32>
    %5 = arith.addf %2, %4 : vector<16x96xf32>
    %6 = arith.truncf %5 : vector<16x96xf32> to vector<16x96xbf16>
    %c0_5 = arith.constant 0 : index
    %c0_6 = arith.constant 0 : index
    %7 = vector.load %arg5[%c0_5, %c0_6] : memref<16x96xbf16, #tpu.memory_space<vmem>>, vector<16x96xbf16>
    tpu.vector_store %arg5[%c0_5, %c0_6], %6 {strides = array<i32>} : memref<16x96xbf16, #tpu.memory_space<vmem>>, vector<16x96xbf16>,
    return
  }
  func.func @transform_0(%arg0: i32, %arg1: i32) -> (i32, i32) {
    %c0_i32 = arith.constant 0 : i32
    %c0_i32_0 = arith.constant 0 : i32
    return %arg0, %c0_i32 : i32, i32
  }
  func.func @transform_1(%arg0: i32, %arg1: i32) -> (i32, i32) {
    %c0_i32 = arith.constant 0 : i32
    %c0_i32_0 = arith.constant 0 : i32
    return %c0_i32, %arg1 : i32, i32
  }
  func.func @transform_2(%arg0: i32, %arg1: i32) -> (i32, i32) {
    %c0_i32 = arith.constant 0 : i32
    %c0_i32_0 = arith.constant 0 : i32
    return %c0_i32, %arg1 : i32, i32
  }
  func.func @transform_3(%arg0: i32, %arg1: i32) -> (i32, i32) {
    %c0_i32 = arith.constant 0 : i32
    return %arg0, %arg1 : i32, i32
  }
}

</mosaic_0001>

<bundles_post_ra>
// kernel: tpu_custom_call.1
= control target key start
LH: loop header
LB: loop body
LE: loop exit
PB: predicated region body
PF: predicated region fallthrough
CT: control target
= control target key end

     0   :  { %8 = vsyncpa [#allocation3], 0  ;;  %s292_s0 = inlined_call_operand.hbm [shape: bf16[16,32], index: 0, kind: input, shape index: {}]   ;;  %s293_s1 = inlined_call_operand.hbm [shape: bf16[32,96], index: 1, kind: input, shape index: {}]   ;;  %s294_s2 = inlined_call_operand.vmem [shape: f32[1,96], index: 2, kind: input, shape index: {}]   ;;  %s295_s3 = inlined_call_operand.hbm [shape: bf16[16,96], index: 3, kind: output, shape index: {}]  }
   0x1   :  { %9 = vsyncpa [#allocation6], 0 }
   0x2   :  { %10 = vsyncpa [#allocation4], 0  ;;  %s244_s12 = smov [#allocation2]  }
   0x3   :  { %s16_s13 = sshll.u32 %s244_s12, 4  ;;  %s17_s13 = int_to_ptr.vmem [resolvable:$true] %s16_s13 }
   0x4   :  { %s186_s14 = scalar_lea.vmem %s17_s13, 128  ;;  %p191_p1 = scmp.lt.s32.totalorder %s17_s13, %s17_s13 }
   0x5   :  { %p187_p0 = scmp.ne.s32.totalorder %s17_s13, %s186_s14  ;;  %p192_p2 = scmp.lt.s32.totalorder %s186_s14, %s186_s14 }
   0x7   :  { %p193_p3 = por %p192_p2, %p191_p1 }
   0x9   :  { %p194_p4 = pnand %p193_p3, %p187_p0 }
   0xb   :  { %197 = shalt.err (!%p194_p4)
}
   0xc   :  { %s245_s15 = smov 64   ;;  %s246_s16 = smov 4  }
   0xd   :  { %22 = dma.hbm_to_vmem [thread:$0]  %s292_s0, 128, %s17_s13, [#allocation3], %s245_s15, %s245_s15, %s246_s16  }
   0xe   :  { %s247_s19 = smov [#allocation5]  }
   0xf   :  { %s28_s20 = sshll.u32 %s247_s19, 4  ;;  %s29_s20 = int_to_ptr.vmem [resolvable:$true] %s28_s20 }
  0x10   :  { %s206_s21 = scalar_lea.vmem %s29_s20, 256  ;;  %p211_p6 = scmp.lt.s32.totalorder %s29_s20, %s29_s20 }
  0x11   :  { %p207_p5 = scmp.ne.s32.totalorder %s29_s20, %s206_s21  ;;  %p212_p7 = scmp.lt.s32.totalorder %s206_s21, %s206_s21 }
  0x13   :  { %p213_p8 = por %p212_p7, %p211_p6 }
  0x15   :  { %p214_p9 = pnand %p213_p8, %p207_p5 }
  0x17   :  { %217 = shalt.err (!%p214_p9)
}
  0x18   :  { %34 = dma.hbm_to_vmem [thread:$0]  %s293_s1, 256, %s29_s20, [#allocation6], %s245_s15, %s245_s15, %s246_s16  }
  0x19   :  { %238 = dma.done.wait [#allocation3], 128  }
  0x1a   :  { %239 = vsyncadd [#allocation3], 4294967168 }
  0x1b   :  { %240 = dma.done.wait [#allocation6], 256  }
  0x1c   :  { %241 = vsyncadd [#allocation6], 4294967040  ;;  %v248_v0 = vmov 0.0   ;;  %vm249_vm0 = vmmov 0   ;;  %v175_v1 = vld [vmem:[#allocation5 + $0x8] sm:$0xff]   ;;  %v176_v2 = vld [vmem:[#allocation5] sm:$0xff]  }
  0x1d   :  { %160 = vmatprep.subr.bf16.mxu0 %v248_v0  ;;  %164 = vmatprep.mubr.msk.bf16.mxu0 %vm249_vm0, %v248_v0  ;;  %v177_v3 = vld [vmem:[#allocation2] sm:$0xff]   ;;  %vm74_vm1 = vcmask 261120   ;;  %vm127_vm2 = vcmask 781312   ;;  %s250_s1 = smov [#allocation7]  }
  0x1e   :  { %161 = vmatpush3.bf16.msra.mxu0 %v175_v1  ;;  %v148_v4 = vld [vmem:[%s294_s2] ss:$0 sm:$0xff]  ;;  %s135_s25 = sshll.u32 %s250_s1, 4  ;;  %s136_s25 = int_to_ptr.vmem [resolvable:$true] %s135_s25 }
  0x1f   :  { %162 = vmatprep.subr.bf16.mxu0 %v248_v0  ;;  %s218_s26 = scalar_lea.vmem %s136_s25, 128  ;;  %p223_p11 = scmp.lt.s32.totalorder %s136_s25, %s136_s25 }
  0x20   :  { %p219_p10 = scmp.ne.s32.totalorder %s136_s25, %s218_s26  ;;  %p224_p12 = scmp.lt.s32.totalorder %s218_s26, %s218_s26 }
  0x22   :  { %163 = vmatpush3.bf16.msra.mxu0 %v176_v2  ;;  %p225_p13 = por %p224_p12, %p223_p11 }
  0x24   :  { %p226_p0 = pnand %p225_p13, %p219_p10 }
  0x25   :  { %165 = vmatmul.mubr.msk.bf16.vlgmr.msra.gmra.mxu0 %vm74_vm1, %v177_v3 }
  0xe5   :  { %v112_v5 = vpop.f32.mrf.mxu0 }
  0xe6   :  { %v113_v6 = vadd.f32 %v148_v4, %v112_v5 }
  0xe7   :  { %v166_v7 = vpop.f32.mrf.mxu0 }
  0xe8   :  { %v155_v8 = vpack.c.bf16 %v113_v6, %v113_v6 }
  0xe9   :  { %v115_v9 = vpop.f32.mrf.mxu0 }
  0xea   :  { %v116_v10 = vadd.f32 %v148_v4, %v115_v9  ;;  %128 = vst.msk [vmem:[#allocation7] sm:$0xf] %vm127_vm2, %v155_v8 }
  0xeb   :  { %v167_v11 = vpop.f32.mrf.mxu0 }
  0xec   :  { %v156_v12 = vpack.c.bf16 %v116_v10, %v116_v10 }
  0xee   :  { %129 = vst.msk [vmem:[#allocation7 + $0x4] sm:$0xf] %vm127_vm2, %v156_v12 }
  0xef   :  { %229 = shalt.err (!%p226_p0)
}
  0xf0   :  { %141 = dma.vmem_to_hbm [thread:$0]  %s136_s25, 128, %s295_s3, [#allocation4], %s245_s15, %s245_s15, %s246_s16  }
  0xf1   :  { %242 = dma.done.wait [#allocation4], 128  }
  0xf2   :  { %243 = vsyncadd [#allocation4], 4294967168 }
  0xf3   :  { %145 = vsyncpa [#allocation3], 1 }
  0xf4   :  { %146 = vsyncpa [#allocation6], 1 }
  0xf5   :  { %147 = vsyncpa [#allocation4], 1 }

</bundles_post_ra>
